<compile_context>
chip_gen: v7x
topology: tpu7x:2x2x1
jax: 0.10.0
libtpu: 0.0.40
codegen_flags: <defaults>
</compile_context>

<pallas_src>
import jax
import jax.numpy as jnp
from jax.experimental import pallas as pl
from jax.experimental.pallas import tpu as pltpu


def _round_up(a, m):
    return ((a + m - 1) // m) * m


def mlp_kernel(x_ref, w1_ref, b1_ref, w2_ref, b2_ref, w3_ref, b3_ref, o_ref):
    # x arrives in its original dtype (f32); cast to the MXU weight dtype (bf16)
    # in-kernel so the wrapper never materializes a second copy of x in HBM.
    x = x_ref[...].astype(w1_ref.dtype)
    # Layer 1: Linear (bf16 MXU matmul, f32 accumulate) + bias/ReLU in f32.
    h1 = jnp.dot(x, w1_ref[...], preferred_element_type=jnp.float32)
    h1 = jnp.maximum(h1 + b1_ref[...], 0.0)
    # Dropout(p=0.2), eval mode -> identity.
    # Layer 2.
    h2 = jnp.dot(h1.astype(w2_ref.dtype), w2_ref[...],
                 preferred_element_type=jnp.float32)
    h2 = jnp.maximum(h2 + b2_ref[...], 0.0)
    # Dropout(p=0.2), eval mode -> identity.
    # Layer 3: Linear + Sigmoid; class lanes padded to 128 -> unmasked stores.
    logits = jnp.dot(h2.astype(w3_ref.dtype), w3_ref[...],
                     preferred_element_type=jnp.float32) + b3_ref[...]
    o_ref[...] = jax.nn.sigmoid(logits).astype(o_ref.dtype)


def prepare_params(params, param_dtype=jnp.bfloat16):
    """One-time parameter prep (hoisted out of the per-forward path).

    Zero-pads every matmul dim to a multiple of 128 (exact: padded rows/cols
    contribute 0 and padded hidden units stay 0 through ReLU) and casts weights
    to bf16 for the MXU.  Biases stay f32 (v5e VPU has no bf16)."""
    w1, b1, w2, b2, w3, b3 = params
    D, H1 = w1.shape
    H2, C = w2.shape[1], w3.shape[1]
    Dp, H1p, H2p, Cp = (_round_up(d, 128) for d in (D, H1, H2, C))

    def pad2(a, rows, cols, dtype):
        return jnp.pad(a, ((0, rows - a.shape[0]),
                           (0, cols - a.shape[1]))).astype(dtype)

    return {
        "w1": pad2(w1, Dp, H1p, param_dtype), "b1": pad2(b1, 1, H1p, jnp.float32),
        "w2": pad2(w2, H1p, H2p, param_dtype), "b2": pad2(b2, 1, H2p, jnp.float32),
        "w3": pad2(w3, H2p, Cp, param_dtype), "b3": pad2(b3, 1, Cp, jnp.float32),
        "input_dim": D, "num_classes": C,
    }


def topic_classifier_forward(x, prepared, *, batch_tile=1024,
                             out_dtype=jnp.float32):
    """x: (B, input_dim) f32.  `prepared`: output of prepare_params()."""
    w1, b1, w2, b2, w3, b3 = (prepared[k]
                              for k in ("w1", "b1", "w2", "b2", "w3", "b3"))
    D, C = prepared["input_dim"], prepared["num_classes"]
    Dp, H1p = w1.shape
    H2p = w2.shape[1]
    Cp = w3.shape[1]
    B = x.shape[0]

    # Grid sizing: (a) tiles capped at batch_tile rows (amortize ~0.35us/step),
    # (b) >= 2 steps whenever B >= 16 so v7x's two TensorCores both get work,
    # (c) TB derived from the tile count so per-tile padding is <= 7 rows.
    n_tiles = max(pl.cdiv(B, batch_tile), 2 if B >= 16 else 1)
    TB = _round_up(pl.cdiv(B, n_tiles), 8)
    Bp = n_tiles * TB

    # Pad x only when actually required (D=384 is already 128-aligned).
    if (Bp, Dp) != (B, D):
        x = jnp.pad(x, ((0, Bp - B), (0, Dp - D)))

    in_specs = [
        pl.BlockSpec((TB, Dp), lambda i: (i, 0)),     # x: tiled over batch
        # Constant index_maps -> weights/biases stay VMEM-resident across steps.
        pl.BlockSpec((Dp, H1p), lambda i: (0, 0)),
        pl.BlockSpec((1, H1p), lambda i: (0, 0)),
        pl.BlockSpec((H1p, H2p), lambda i: (0, 0)),
        pl.BlockSpec((1, H2p), lambda i: (0, 0)),
        pl.BlockSpec((H2p, Cp), lambda i: (0, 0)),
        pl.BlockSpec((1, Cp), lambda i: (0, 0)),
    ]
    out_specs = pl.BlockSpec((TB, Cp), lambda i: (i, 0))

    w_bytes = sum(a.size * a.dtype.itemsize for a in (w1, w2, w3))
    b_bytes = sum(a.size * a.dtype.itemsize for a in (b1, b2, b3))
    cost = pl.CostEstimate(
        flops=2 * Bp * (Dp * H1p + H1p * H2p + H2p * Cp),
        transcendentals=Bp * Cp,                       # sigmoid exp
        bytes_accessed=(Bp * Dp * x.dtype.itemsize + w_bytes + b_bytes
                        + Bp * Cp * jnp.dtype(out_dtype).itemsize),
    )

    out_p = pl.pallas_call(
        mlp_kernel,
        out_shape=jax.ShapeDtypeStruct((Bp, Cp), out_dtype),
        grid_spec=pltpu.PrefetchScalarGridSpec(
            num_scalar_prefetch=0,
            grid=(n_tiles,),
            in_specs=in_specs,
            out_specs=out_specs,
        ),
        compiler_params=pltpu.CompilerParams(
            dimension_semantics=("parallel",),   # v7x: batch tiles over both TCs
        ),
        cost_estimate=cost,
    )(x, w1, b1, w2, b2, w3, b3)

    # Drop batch padding and the padded (sigmoid(0)=0.5) class lanes.
    return out_p[:B, :C]


def init_params(key, input_dim, hidden_dim1, hidden_dim2, num_classes):
    """Deterministic init mimicking nn.Linear default (uniform +/- 1/sqrt(fan_in))."""
    def linear(key, fan_in, fan_out):
        k_w, k_b = jax.random.split(key)
        bound = 1.0 / jnp.sqrt(fan_in)
        w = jax.random.uniform(k_w, (fan_in, fan_out), jnp.float32, -bound, bound)
        b = jax.random.uniform(k_b, (1, fan_out), jnp.float32, -bound, bound)
        return w, b

    k1, k2, k3 = jax.random.split(key, 3)
    w1, b1 = linear(k1, input_dim, hidden_dim1)
    w2, b2 = linear(k2, hidden_dim1, hidden_dim2)
    w3, b3 = linear(k3, hidden_dim2, num_classes)
    return (w1, b1, w2, b2, w3, b3)


def ref_forward(x, params):
    """Pure-JAX reference mimicking the kernel's bf16-storage / f32-accumulate math."""
    w1, b1, w2, b2, w3, b3 = params
    bf = jnp.bfloat16
    h1 = jnp.dot(x.astype(bf), w1.astype(bf), preferred_element_type=jnp.float32)
    h1 = jnp.maximum(h1 + b1, 0.0)
    h2 = jnp.dot(h1.astype(bf), w2.astype(bf), preferred_element_type=jnp.float32)
    h2 = jnp.maximum(h2 + b2, 0.0)
    logits = jnp.dot(h2.astype(bf), w3.astype(bf),
                     preferred_element_type=jnp.float32) + b3
    return jax.nn.sigmoid(logits)


if __name__ == "__main__":
    # Module-consistent small shapes: sbert-style embedding dim 384, hidden dims
    # 512 / 256 from the module defaults, 7 classes.
    input_dim, hidden_dim1, hidden_dim2, num_classes = 384, 512, 256, 7

    key = jax.random.PRNGKey(0)
    k_x1, k_x2, k_p = jax.random.split(key, 3)
    params = init_params(k_p, input_dim, hidden_dim1, hidden_dim2, num_classes)
    prepared = prepare_params(params)      # runs ONCE, not per forward call

    # jit with `prepared` closed over: padded weights are compile-time constants,
    # logical dims stay Python ints (used for slicing / padding decisions).
    fwd = jax.jit(lambda xb: topic_classifier_forward(xb, prepared))

    # Exercise both the single-tile path (B=8) and the 2-tile ragged path (B=300).
    for k_x, batch in ((k_x1, 8), (k_x2, 300)):
        x = jax.random.normal(k_x, (batch, input_dim), jnp.float32)
        out = fwd(x)
        jax.block_until_ready(out)

        assert out.shape == (batch, num_classes), out.shape
        assert bool(jnp.all((out >= 0.0) & (out <= 1.0)))
        ref = ref_forward(x, params)
        err = float(jnp.max(jnp.abs(out - ref)))
        assert bool(jnp.allclose(out, ref, atol=2e-3)), err

    print("KERNEL_OK")
</pallas_src>

<mosaic_0001>
module attributes {stable_mosaic.version = 11 : i64} {
  func.func @mlp_kernel(%arg0: i32, %arg1: memref<8x384xf32, #tpu.memory_space<vmem>>, %arg2: memref<384x512xbf16, #tpu.memory_space<vmem>>, %arg3: memref<1x512xf32, #tpu.memory_space<vmem>>, %arg4: memref<512x256xbf16, #tpu.memory_space<vmem>>, %arg5: memref<1x256xf32, #tpu.memory_space<vmem>>, %arg6: memref<256x128xbf16, #tpu.memory_space<vmem>>, %arg7: memref<1x128xf32, #tpu.memory_space<vmem>>, %arg8: memref<8x128xf32, #tpu.memory_space<vmem>>) attributes {dimension_semantics = [#tpu.dimension_semantics<parallel>], iteration_bounds = array<i64: 1>, scalar_prefetch = 0 : i64, scratch_operands = 0 : i64, tpu.core_type = #tpu.core_type<tc>, window_params = [{transform_indices = @transform_0, window_bounds = array<i64: 8, 384>}, {pipeline_mode = #tpu.pipeline_mode<synchronous>, transform_indices = @transform_1, window_bounds = array<i64: 384, 512>}, {pipeline_mode = #tpu.pipeline_mode<synchronous>, transform_indices = @transform_2, window_bounds = array<i64: 1, 512>}, {pipeline_mode = #tpu.pipeline_mode<synchronous>, transform_indices = @transform_3, window_bounds = array<i64: 512, 256>}, {pipeline_mode = #tpu.pipeline_mode<synchronous>, transform_indices = @transform_4, window_bounds = array<i64: 1, 256>}, {pipeline_mode = #tpu.pipeline_mode<synchronous>, transform_indices = @transform_5, window_bounds = array<i64: 256, 128>}, {pipeline_mode = #tpu.pipeline_mode<synchronous>, transform_indices = @transform_6, window_bounds = array<i64: 1, 128>}, {transform_indices = @transform_7, window_bounds = array<i64: 8, 128>}]} {
    %c0 = arith.constant 0 : index
    %c0_0 = arith.constant 0 : index
    %0 = vector.load %arg1[%c0, %c0_0] : memref<8x384xf32, #tpu.memory_space<vmem>>, vector<8x384xf32>
    %1 = arith.truncf %0 : vector<8x384xf32> to vector<8x384xbf16>
    %c0_1 = arith.constant 0 : index
    %c0_2 = arith.constant 0 : index
    %2 = vector.load %arg2[%c0_1, %c0_2] : memref<384x512xbf16, #tpu.memory_space<vmem>>, vector<384x512xbf16>
    %cst = arith.constant dense<0.000000e+00> : vector<8x512xf32>
    %3 = tpu.matmul %1, %2, %cst {dimension_numbers = #tpu.dot_dimension_numbers<[1], [0], [0], [1], [0, 0, 1, 1], [], []>} : vector<8x384xbf16>, vector<384x512xbf16>, vector<8x512xf32> -> vector<8x512xf32>
    %c0_3 = arith.constant 0 : index
    %c0_4 = arith.constant 0 : index
    %4 = vector.load %arg3[%c0_3, %c0_4] : memref<1x512xf32, #tpu.memory_space<vmem>>, vector<1x512xf32>
    %5 = vector.broadcast %4 : vector<1x512xf32> to vector<8x512xf32>
    %6 = arith.addf %3, %5 : vector<8x512xf32>
    %cst_5 = arith.constant 0.000000e+00 : f32
    %7 = vector.broadcast %cst_5 : f32 to vector<8x512xf32>
    %8 = arith.maximumf %6, %7 : vector<8x512xf32>
    %9 = arith.truncf %8 : vector<8x512xf32> to vector<8x512xbf16>
    %c0_6 = arith.constant 0 : index
    %c0_7 = arith.constant 0 : index
    %10 = vector.load %arg4[%c0_6, %c0_7] : memref<512x256xbf16, #tpu.memory_space<vmem>>, vector<512x256xbf16>
    %cst_8 = arith.constant dense<0.000000e+00> : vector<8x256xf32>
    %11 = tpu.matmul %9, %10, %cst_8 {dimension_numbers = #tpu.dot_dimension_numbers<[1], [0], [0], [1], [0, 0, 1, 1], [], []>} : vector<8x512xbf16>, vector<512x256xbf16>, vector<8x256xf32> -> vector<8x256xf32>
    %c0_9 = arith.constant 0 : index
    %c0_10 = arith.constant 0 : index
    %12 = vector.load %arg5[%c0_9, %c0_10] : memref<1x256xf32, #tpu.memory_space<vmem>>, vector<1x256xf32>
    %13 = vector.broadcast %12 : vector<1x256xf32> to vector<8x256xf32>
    %14 = arith.addf %11, %13 : vector<8x256xf32>
    %cst_11 = arith.constant 0.000000e+00 : f32
    %15 = vector.broadcast %cst_11 : f32 to vector<8x256xf32>
    %16 = arith.maximumf %14, %15 : vector<8x256xf32>
    %17 = arith.truncf %16 : vector<8x256xf32> to vector<8x256xbf16>
    %c0_12 = arith.constant 0 : index
    %c0_13 = arith.constant 0 : index
    %18 = vector.load %arg6[%c0_12, %c0_13] : memref<256x128xbf16, #tpu.memory_space<vmem>>, vector<256x128xbf16>
    %cst_14 = arith.constant dense<0.000000e+00> : vector<8x128xf32>
    %19 = tpu.matmul %17, %18, %cst_14 {dimension_numbers = #tpu.dot_dimension_numbers<[1], [0], [0], [1], [0, 0, 1, 1], [], []>} : vector<8x256xbf16>, vector<256x128xbf16>, vector<8x128xf32> -> vector<8x128xf32>
    %c0_15 = arith.constant 0 : index
    %c0_16 = arith.constant 0 : index
    %20 = vector.load %arg7[%c0_15, %c0_16] : memref<1x128xf32, #tpu.memory_space<vmem>>, vector<1x128xf32>
    %21 = vector.broadcast %20 : vector<1x128xf32> to vector<8x128xf32>
    %22 = arith.addf %19, %21 : vector<8x128xf32>
    %23 = arith.negf %22 : vector<8x128xf32>
    %24 = math.exp %23 : vector<8x128xf32>
    %cst_17 = arith.constant 1.000000e+00 : f32
    %25 = vector.broadcast %cst_17 : f32 to vector<8x128xf32>
    %26 = arith.addf %25, %24 : vector<8x128xf32>
    %27 = arith.divf %25, %26 : vector<8x128xf32>
    %c0_18 = arith.constant 0 : index
    %c0_19 = arith.constant 0 : index
    %28 = vector.load %arg8[%c0_18, %c0_19] : memref<8x128xf32, #tpu.memory_space<vmem>>, vector<8x128xf32>
    tpu.vector_store %arg8[%c0_18, %c0_19], %27 {strides = array<i32>} : memref<8x128xf32, #tpu.memory_space<vmem>>, vector<8x128xf32>,
    return
  }
  func.func @transform_0(%arg0: i32) -> (i32, i32) {
    %c0_i32 = arith.constant 0 : i32
    %c0_i32_0 = arith.constant 0 : i32
    return %arg0, %c0_i32 : i32, i32
  }
  func.func @transform_1(%arg0: i32) -> (i32, i32) {
    %c0_i32 = arith.constant 0 : i32
    %c0_i32_0 = arith.constant 0 : i32
    %c0_i32_1 = arith.constant 0 : i32
    return %c0_i32, %c0_i32_0 : i32, i32
  }
  func.func @transform_2(%arg0: i32) -> (i32, i32) {
    %c0_i32 = arith.constant 0 : i32
    %c0_i32_0 = arith.constant 0 : i32
    %c0_i32_1 = arith.constant 0 : i32
    return %c0_i32, %c0_i32_0 : i32, i32
  }
  func.func @transform_3(%arg0: i32) -> (i32, i32) {
    %c0_i32 = arith.constant 0 : i32
    %c0_i32_0 = arith.constant 0 : i32
    %c0_i32_1 = arith.constant 0 : i32
    return %c0_i32, %c0_i32_0 : i32, i32
  }
  func.func @transform_4(%arg0: i32) -> (i32, i32) {
    %c0_i32 = arith.constant 0 : i32
    %c0_i32_0 = arith.constant 0 : i32
    %c0_i32_1 = arith.constant 0 : i32
    return %c0_i32, %c0_i32_0 : i32, i32
  }
  func.func @transform_5(%arg0: i32) -> (i32, i32) {
    %c0_i32 = arith.constant 0 : i32
    %c0_i32_0 = arith.constant 0 : i32
    %c0_i32_1 = arith.constant 0 : i32
    return %c0_i32, %c0_i32_0 : i32, i32
  }
  func.func @transform_6(%arg0: i32) -> (i32, i32) {
    %c0_i32 = arith.constant 0 : i32
    %c0_i32_0 = arith.constant 0 : i32
    %c0_i32_1 = arith.constant 0 : i32
    return %c0_i32, %c0_i32_0 : i32, i32
  }
  func.func @transform_7(%arg0: i32) -> (i32, i32) {
    %c0_i32 = arith.constant 0 : i32
    %c0_i32_0 = arith.constant 0 : i32
    return %arg0, %c0_i32 : i32, i32
  }
}

</mosaic_0001>

<bundles_post_ra>
// kernel: _lambda_.1
= control target key start
LH: loop header
LB: loop body
LE: loop exit
PB: predicated region body
PF: predicated region fallthrough
CT: control target
= control target key end

     0   :  { %v1984_v2 = vmov 0   ;;  %s2614_s0 = inlined_call_operand.vmem [shape: f32[8,384], index: 0, kind: input, shape index: {}]   ;;  %s2615_s1 = inlined_call_operand.vmem [shape: bf16[384,512], index: 1, kind: input, shape index: {}]   ;;  %s2616_s2 = inlined_call_operand.vmem [shape: f32[1,512], index: 2, kind: input, shape index: {}]   ;;  %s2617_s3 = inlined_call_operand.vmem [shape: bf16[512,256], index: 3, kind: input, shape index: {}]   ;;  %s2618_s4 = inlined_call_operand.vmem [shape: f32[1,256], index: 4, kind: input, shape index: {}]   ;;  %s2619_s5 = inlined_call_operand.vmem [shape: bf16[256,128], index: 5, kind: input, shape index: {}]   ;;  %s2620_s6 = inlined_call_operand.vmem [shape: f32[1,128], index: 6, kind: input, shape index: {}]   ;;  %s2621_s7 = inlined_call_operand.hbm [shape: f32[8,128], index: 7, kind: output, shape index: {}]  }
   0x1   :  { %v1700_v0 = vld [vmem:[%s2615_s1 + $0x4] ss:$16 sps:$4 sm:$0xff]   ;;  %v1702_v1 = vld [vmem:[%s2615_s1] ss:$16 sps:$4 sm:$0xff]   ;;  %705 = vmatprep.mubr.bf16.mxu0 %v1984_v2  ;;  %v29_v31 = vld [vmem:[%s2614_s0 + $0x8] sm:$0xff] }
   0x2   :  { %632 = vmatprep.subr.bf16.mxu1 %v1700_v0  ;;  %v1703_v3 = vld [vmem:[%s2615_s1 + $0x24] ss:$16 sps:$4 sm:$0xff]   ;;  %v1705_v4 = vld [vmem:[%s2615_s1 + $0x20] ss:$16 sps:$4 sm:$0xff]   ;;  %v32_v34 = vpack.c.bf16 %v29_v31, %v29_v31  ;;  %v1774_v54 = vld [vmem:[%s2615_s1 + $0xc] ss:$16 sps:$4 sm:$0xff]  }
   0x3   :  { %633 = vmatpush1.bf16.msra.mxu1 %v1702_v1  ;;  %v1706_v5 = vld [vmem:[%s2615_s1 + $0x44] ss:$16 sps:$4 sm:$0xff]   ;;  %v1708_v6 = vld [vmem:[%s2615_s1 + $0x40] ss:$16 sps:$4 sm:$0xff]   ;;  %v1772_v56 = vld [vmem:[%s2615_s1 + $0x8] ss:$16 sps:$4 sm:$0xff]  }
   0x4   :  { %634 = vmatprep.subr.bf16.mxu1 %v1703_v3  ;;  %v1709_v7 = vld [vmem:[%s2615_s1 + $0x64] ss:$16 sps:$4 sm:$0xff]   ;;  %v1711_v8 = vld [vmem:[%s2615_s1 + $0x60] ss:$16 sps:$4 sm:$0xff]   ;;  %664 = vmatprep.mubr.bf16.mxu1 %v32_v34  ;;  %v1777_v57 = vld [vmem:[%s2615_s1 + $0x2c] ss:$16 sps:$4 sm:$0xff]  }
   0x5   :  { %v1712_v9 = vld [vmem:[%s2615_s1 + $0x84] ss:$16 sps:$4 sm:$0xff]   ;;  %v1729_v11 = vld [vmem:[%s2615_s1 + $0x200] ss:$16 sps:$4 sm:$0xff]   ;;  %v1775_v60 = vld [vmem:[%s2615_s1 + $0x28] ss:$16 sps:$4 sm:$0xff]  }
   0x6   :  { %v1727_v10 = vld [vmem:[%s2615_s1 + $0x204] ss:$16 sps:$4 sm:$0xff]   ;;  %v1714_v12 = vld [vmem:[%s2615_s1 + $0x80] ss:$16 sps:$4 sm:$0xff]   ;;  %v1780_v62 = vld [vmem:[%s2615_s1 + $0x4c] ss:$16 sps:$4 sm:$0xff]  }
   0x7   :  { %635 = vmatpush1.bf16.msra.mxu1 %v1705_v4  ;;  %673 = vmatprep.subr.bf16.mxu0 %v1727_v10  ;;  %v1733_v13 = vld [vmem:[%s2615_s1 + $0x224] ss:$16 sps:$4 sm:$0xff]   ;;  %v1735_v14 = vld [vmem:[%s2615_s1 + $0x220] ss:$16 sps:$4 sm:$0xff]   ;;  %v1778_v1 = vld [vmem:[%s2615_s1 + $0x48] ss:$16 sps:$4 sm:$0xff]  }
   0x8   :  { %636 = vmatprep.subr.bf16.mxu1 %v1706_v5  ;;  %674 = vmatpush1.bf16.msra.mxu0 %v1729_v11  ;;  %v1715_v15 = vld [vmem:[%s2615_s1 + $0xa4] ss:$16 sps:$4 sm:$0xff]   ;;  %v1717_v16 = vld [vmem:[%s2615_s1 + $0xa0] ss:$16 sps:$4 sm:$0xff]   ;;  %v1783_v3 = vld [vmem:[%s2615_s1 + $0x6c] ss:$16 sps:$4 sm:$0xff]  }
   0x9   :  { %675 = vmatprep.subr.bf16.mxu0 %v1733_v13  ;;  %v1739_v17 = vld [vmem:[%s2615_s1 + $0x244] ss:$16 sps:$4 sm:$0xff]   ;;  %v1741_v19 = vld [vmem:[%s2615_s1 + $0x240] ss:$16 sps:$4 sm:$0xff]   ;;  %v1784_v10 = vld [vmem:[%s2615_s1 + $0x88] ss:$16 sps:$4 sm:$0xff]  }
   0xa   :  { %v1718_v18 = vld [vmem:[%s2615_s1 + $0xc4] ss:$16 sps:$4 sm:$0xff]   ;;  %v1720_v21 = vld [vmem:[%s2615_s1 + $0xc0] ss:$16 sps:$4 sm:$0xff]   ;;  %v1789_v11 = vld [vmem:[%s2615_s1 + $0xac] ss:$16 sps:$4 sm:$0xff]  }
   0xb   :  { %637 = vmatpush1.bf16.msra.mxu1 %v1708_v6  ;;  %v1745_v20 = vld [vmem:[%s2615_s1 + $0x264] ss:$16 sps:$4 sm:$0xff]   ;;  %v1747_v23 = vld [vmem:[%s2615_s1 + $0x260] ss:$16 sps:$4 sm:$0xff]   ;;  %v1781_v6 = vld [vmem:[%s2615_s1 + $0x68] ss:$16 sps:$4 sm:$0xff]  }
   0xc   :  { %638 = vmatprep.subr.bf16.mxu1 %v1709_v7  ;;  %676 = vmatpush1.bf16.msra.mxu0 %v1735_v14  ;;  %v1721_v22 = vld [vmem:[%s2615_s1 + $0xe4] ss:$16 sps:$4 sm:$0xff]   ;;  %v1723_v25 = vld [vmem:[%s2615_s1 + $0xe0] ss:$16 sps:$4 sm:$0xff]   ;;  %v1786_v7 = vld [vmem:[%s2615_s1 + $0x8c] ss:$16 sps:$4 sm:$0xff]  }
   0xd   :  { %677 = vmatprep.subr.bf16.mxu0 %v1739_v17  ;;  %v1751_v24 = vld [vmem:[%s2615_s1 + $0x284] ss:$16 sps:$4 sm:$0xff]   ;;  %v1753_v27 = vld [vmem:[%s2615_s1 + $0x280] ss:$16 sps:$4 sm:$0xff]   ;;  %v1787_v14 = vld [vmem:[%s2615_s1 + $0xa8] ss:$16 sps:$4 sm:$0xff]  }
   0xe   :  { %v1724_v26 = vld [vmem:[%s2615_s1 + $0x104] ss:$16 sps:$4 sm:$0xff]   ;;  %v1726_v29 = vld [vmem:[%s2615_s1 + $0x100] ss:$16 sps:$4 sm:$0xff]   ;;  %v1804_v31 = vld [vmem:[%s2615_s1 + $0x14c] ss:$16 sps:$4 sm:$0xff]  }
   0xf   :  { %639 = vmatpush1.bf16.msra.mxu1 %v1711_v8  ;;  %v1757_v28 = vld [vmem:[%s2615_s1 + $0x2a4] ss:$16 sps:$4 sm:$0xff]   ;;  %v1759_v30 = vld [vmem:[%s2615_s1 + $0x2a0] ss:$16 sps:$4 sm:$0xff]  }
  0x10   :  { %640 = vmatprep.subr.bf16.mxu1 %v1712_v9  ;;  %678 = vmatpush1.bf16.msra.mxu0 %v1741_v19  ;;  %v1730_v32 = vld [vmem:[%s2615_s1 + $0x124] ss:$16 sps:$4 sm:$0xff]   ;;  %v1732_v35 = vld [vmem:[%s2615_s1 + $0x120] ss:$16 sps:$4 sm:$0xff]   ;;  %v1795_v19 = vld [vmem:[%s2615_s1 + $0xec] ss:$16 sps:$4 sm:$0xff]  }
  0x11   :  { %679 = vmatprep.subr.bf16.mxu0 %v1745_v20  ;;  %v1763_v33 = vld [vmem:[%s2615_s1 + $0x2c4] ss:$16 sps:$4 sm:$0xff]   ;;  %v1765_v36 = vld [vmem:[%s2615_s1 + $0x2c0] ss:$16 sps:$4 sm:$0xff]  }
  0x12   :  { %v1736_v37 = vld [vmem:[%s2615_s1 + $0x144] ss:$16 sps:$4 sm:$0xff]   ;;  %v1738_v39 = vld [vmem:[%s2615_s1 + $0x140] ss:$16 sps:$4 sm:$0xff]  }
  0x13   :  { %641 = vmatpush1.bf16.msra.mxu1 %v1714_v12  ;;  %v1769_v38 = vld [vmem:[%s2615_s1 + $0x2e4] ss:$16 sps:$4 sm:$0xff]   ;;  %v1771_v40 = vld [vmem:[%s2615_s1 + $0x2e0] ss:$16 sps:$4 sm:$0xff]  }
  0x14   :  { %642 = vmatprep.subr.bf16.mxu1 %v1715_v15  ;;  %680 = vmatpush1.bf16.msra.mxu0 %v1747_v23  ;;  %v30_v41 = vld [vmem:[%s2614_s0 + $0x10] sm:$0xff]  ;;  %v28_v53 = vld [vmem:[%s2614_s0] sm:$0xff]  ;;  %v1792_v15 = vld [vmem:[%s2615_s1 + $0xcc] ss:$16 sps:$4 sm:$0xff]  }
  0x15   :  { %681 = vmatprep.subr.bf16.mxu0 %v1751_v24  ;;  %v1742_v42 = vld [vmem:[%s2615_s1 + $0x164] ss:$16 sps:$4 sm:$0xff]   ;;  %v2150_v43 = vpack.c.bf16 %v30_v41, %v30_v41  ;;  %v1744_v44 = vld [vmem:[%s2615_s1 + $0x160] ss:$16 sps:$4 sm:$0xff]   ;;  %v2186_v55 = vpack.c.bf16 %v28_v53, %v28_v53  ;;  %v1798_v23 = vld [vmem:[%s2615_s1 + $0x10c] ss:$16 sps:$4 sm:$0xff]  }
  0x16   :  { %v1748_v45 = vld [vmem:[%s2615_s1 + $0x184] ss:$16 sps:$4 sm:$0xff]   ;;  %v1750_v46 = vld [vmem:[%s2615_s1 + $0x180] ss:$16 sps:$4 sm:$0xff]  }
  0x17   :  { %643 = vmatpush1.bf16.msra.mxu1 %v1717_v16  ;;  %v1754_v47 = vld [vmem:[%s2615_s1 + $0x1a4] ss:$16 sps:$4 sm:$0xff]   ;;  %v1756_v48 = vld [vmem:[%s2615_s1 + $0x1a0] ss:$16 sps:$4 sm:$0xff]  }
  0x18   :  { %644 = vmatprep.subr.bf16.mxu1 %v1718_v18  ;;  %682 = vmatpush1.bf16.msra.mxu0 %v1753_v27  ;;  %v1760_v49 = vld [vmem:[%s2615_s1 + $0x1c4] ss:$16 sps:$4 sm:$0xff]   ;;  %v1762_v50 = vld [vmem:[%s2615_s1 + $0x1c0] ss:$16 sps:$4 sm:$0xff]   ;;  %v1790_v18 = vld [vmem:[%s2615_s1 + $0xc8] ss:$16 sps:$4 sm:$0xff]  }
  0x19   :  { %683 = vmatprep.subr.bf16.mxu0 %v1757_v28  ;;  %v1766_v51 = vld [vmem:[%s2615_s1 + $0x1e4] ss:$16 sps:$4 sm:$0xff]   ;;  %v1768_v52 = vld [vmem:[%s2615_s1 + $0x1e0] ss:$16 sps:$4 sm:$0xff]   ;;  %v1801_v27 = vld [vmem:[%s2615_s1 + $0x12c] ss:$16 sps:$4 sm:$0xff]  }
  0x1a   :  { %v1844_v58 = vld [vmem:[%s2617_s3] ss:$8 sps:$4 sm:$0xff]   ;;  %v1846_v59 = vld [vmem:[%s2617_s3 + $0x4] ss:$8 sps:$4 sm:$0xff]   ;;  %v1849_v61 = vld [vmem:[%s2617_s3 + $0x14] ss:$8 sps:$4 sm:$0xff]  }
  0x1b   :  { %645 = vmatpush1.bf16.msra.mxu1 %v1720_v21  ;;  %v1847_v63 = vld [vmem:[%s2617_s3 + $0x10] ss:$8 sps:$4 sm:$0xff]   ;;  %v1852_v0 = vld [vmem:[%s2617_s3 + $0x24] ss:$8 sps:$4 sm:$0xff]   ;;  %v1850_v4 = vld [vmem:[%s2617_s3 + $0x20] ss:$8 sps:$4 sm:$0xff]  }
  0x1c   :  { %646 = vmatprep.subr.bf16.mxu1 %v1721_v22  ;;  %684 = vmatpush1.bf16.msra.mxu0 %v1759_v30  ;;  %v1855_v5 = vld [vmem:[%s2617_s3 + $0x34] ss:$8 sps:$4 sm:$0xff]   ;;  %v1853_v8 = vld [vmem:[%s2617_s3 + $0x30] ss:$8 sps:$4 sm:$0xff]   ;;  %v1858_v9 = vld [vmem:[%s2617_s3 + $0x44] ss:$8 sps:$4 sm:$0xff]  }
  0x1d   :  { %685 = vmatprep.subr.bf16.mxu0 %v1763_v33  ;;  %v1856_v12 = vld [vmem:[%s2617_s3 + $0x40] ss:$8 sps:$4 sm:$0xff]   ;;  %v1861_v13 = vld [vmem:[%s2617_s3 + $0x54] ss:$8 sps:$4 sm:$0xff]   ;;  %v1859_v16 = vld [vmem:[%s2617_s3 + $0x50] ss:$8 sps:$4 sm:$0xff]  }
  0x1e   :  { %v1864_v17 = vld [vmem:[%s2617_s3 + $0x64] ss:$8 sps:$4 sm:$0xff]   ;;  %v1862_v20 = vld [vmem:[%s2617_s3 + $0x60] ss:$8 sps:$4 sm:$0xff]   ;;  %v1867_v21 = vld [vmem:[%s2617_s3 + $0x74] ss:$8 sps:$4 sm:$0xff]  }
  0x1f   :  { %647 = vmatpush1.bf16.msra.mxu1 %v1723_v25  ;;  %v1793_v22 = vld [vmem:[%s2615_s1 + $0xe8] ss:$16 sps:$4 sm:$0xff]   ;;  %v1870_v25 = vld [vmem:[%s2617_s3 + $0x84] ss:$8 sps:$4 sm:$0xff]  }
  0x20   :  { %648 = vmatprep.subr.bf16.mxu1 %v1724_v26  ;;  %686 = vmatpush1.bf16.msra.mxu0 %v1765_v36  ;;  %v1865_v24 = vld [vmem:[%s2617_s3 + $0x70] ss:$8 sps:$4 sm:$0xff]   ;;  %v1868_v28 = vld [vmem:[%s2617_s3 + $0x80] ss:$8 sps:$4 sm:$0xff]   ;;  %v1876_v33 = vld [vmem:[%s2617_s3 + $0xa4] ss:$8 sps:$4 sm:$0xff]  }
  0x21   :  { %687 = vmatprep.subr.bf16.mxu0 %v1769_v38  ;;  %v1796_v26 = vld [vmem:[%s2615_s1 + $0x108] ss:$16 sps:$4 sm:$0xff]  }
  0x22   :  { %v1799_v30 = vld [vmem:[%s2615_s1 + $0x128] ss:$16 sps:$4 sm:$0xff]  }
  0x23   :  { %649 = vmatpush1.bf16.msra.mxu1 %v1726_v29  ;;  %v1873_v29 = vld [vmem:[%s2617_s3 + $0x94] ss:$8 sps:$4 sm:$0xff]   ;;  %v1874_v36 = vld [vmem:[%s2617_s3 + $0xa0] ss:$8 sps:$4 sm:$0xff]  }
  0x24   :  { %650 = vmatprep.subr.bf16.mxu1 %v1730_v32  ;;  %688 = vmatpush1.bf16.msra.mxu0 %v1771_v40  ;;  %v1871_v32 = vld [vmem:[%s2617_s3 + $0x90] ss:$8 sps:$4 sm:$0xff]  }
  0x25   :  { %1200 = vmatprep.subr.bf16.mxu0 %v1846_v59 }
  0x27   :  { %651 = vmatpush1.bf16.msra.mxu1 %v1732_v35  ;;  %706 = vmatmul.mubr.bf16.vlgmr.msra.gmra.mrb[0].mxu0 %v2150_v43  ;;  %v1807_v35 = vld [vmem:[%s2615_s1 + $0x16c] ss:$16 sps:$4 sm:$0xff]  }
  0x28   :  { %652 = vmatprep.subr.bf16.mxu1 %v1736_v37  ;;  %1201 = vmatpush1.bf16.msra.mxu0 %v1844_v58  ;;  %v1879_v37 = vld [vmem:[%s2617_s3 + $0xb4] ss:$8 sps:$4 sm:$0xff]  }
  0x29   :  { %1202 = vmatprep.subr.bf16.mxu0 %v1849_v61 }
  0x2b   :  { %653 = vmatpush1.bf16.msra.mxu1 %v1738_v39 }
  0x2c   :  { %654 = vmatprep.subr.bf16.mxu1 %v1742_v42  ;;  %1203 = vmatpush1.bf16.msra.mxu0 %v1847_v63 }
  0x2d   :  { %1204 = vmatprep.subr.bf16.mxu0 %v1852_v0 }
  0x2f   :  { %655 = vmatpush1.bf16.msra.mxu1 %v1744_v44 }
  0x30   :  { %656 = vmatprep.subr.bf16.mxu1 %v1748_v45  ;;  %1205 = vmatpush1.bf16.msra.mxu0 %v1850_v4 }
  0x31   :  { %1206 = vmatprep.subr.bf16.mxu0 %v1855_v5 }
  0x33   :  { %657 = vmatpush1.bf16.msra.mxu1 %v1750_v46 }
  0x34   :  { %658 = vmatprep.subr.bf16.mxu1 %v1754_v47  ;;  %1207 = vmatpush1.bf16.msra.mxu0 %v1853_v8 }
  0x35   :  { %1208 = vmatprep.subr.bf16.mxu0 %v1858_v9 }
  0x37   :  { %659 = vmatpush1.bf16.msra.mxu1 %v1756_v48 }
  0x38   :  { %660 = vmatprep.subr.bf16.mxu1 %v1760_v49  ;;  %1209 = vmatpush1.bf16.msra.mxu0 %v1856_v12 }
  0x39   :  { %1210 = vmatprep.subr.bf16.mxu0 %v1861_v13 }
  0x3b   :  { %661 = vmatpush1.bf16.msra.mxu1 %v1762_v50 }
  0x3c   :  { %662 = vmatprep.subr.bf16.mxu1 %v1766_v51  ;;  %1211 = vmatpush1.bf16.msra.mxu0 %v1859_v16 }
  0x3d   :  { %1212 = vmatprep.subr.bf16.mxu0 %v1864_v17 }
  0x3f   :  { %663 = vmatpush1.bf16.msra.mxu1 %v1768_v52 }
  0x40   :  { %714 = vmatprep.subr.bf16.mxu1 %v1774_v54  ;;  %1213 = vmatpush1.bf16.msra.mxu0 %v1862_v20 }
  0x41   :  { %1214 = vmatprep.subr.bf16.mxu0 %v1867_v21 }
  0x42   :  { %665 = vmatmul.mubr.bf16.vlgmr.msra.gmra.mrb[0].mxu1 %v2186_v55 }
  0x43   :  { %715 = vmatpush1.bf16.msra.mxu1 %v1772_v56  ;;  %746 = vmatprep.mubr.bf16.mxu1 %v32_v34  ;;  %v1802_v34 = vld [vmem:[%s2615_s1 + $0x148] ss:$16 sps:$4 sm:$0xff]  }
  0x44   :  { %716 = vmatprep.subr.bf16.mxu1 %v1777_v57  ;;  %1215 = vmatpush1.bf16.msra.mxu0 %v1865_v24 }
  0x45   :  { %1216 = vmatprep.subr.bf16.mxu0 %v1870_v25 }
  0x47   :  { %717 = vmatpush1.bf16.msra.mxu1 %v1775_v60 }
  0x48   :  { %718 = vmatprep.subr.bf16.mxu1 %v1780_v62  ;;  %1217 = vmatpush1.bf16.msra.mxu0 %v1868_v28 }
  0x49   :  { %1218 = vmatprep.subr.bf16.mxu0 %v1873_v29 }
  0x4b   :  { %719 = vmatpush1.bf16.msra.mxu1 %v1778_v1 }
  0x4c   :  { %720 = vmatprep.subr.bf16.mxu1 %v1783_v3  ;;  %1219 = vmatpush1.bf16.msra.mxu0 %v1871_v32 }
  0x4d   :  { %1220 = vmatprep.subr.bf16.mxu0 %v1876_v33 }
  0x4f   :  { %721 = vmatpush1.bf16.msra.mxu1 %v1781_v6 }
  0x50   :  { %722 = vmatprep.subr.bf16.mxu1 %v1786_v7 }
  0x53   :  { %723 = vmatpush1.bf16.msra.mxu1 %v1784_v10 }
  0x54   :  { %724 = vmatprep.subr.bf16.mxu1 %v1789_v11 }
  0x57   :  { %725 = vmatpush1.bf16.msra.mxu1 %v1787_v14 }
  0x58   :  { %726 = vmatprep.subr.bf16.mxu1 %v1792_v15 }
  0x5b   :  { %727 = vmatpush1.bf16.msra.mxu1 %v1790_v18 }
  0x5c   :  { %728 = vmatprep.subr.bf16.mxu1 %v1795_v19 }
  0x5f   :  { %729 = vmatpush1.bf16.msra.mxu1 %v1793_v22 }
  0x60   :  { %730 = vmatprep.subr.bf16.mxu1 %v1798_v23 }
  0x63   :  { %731 = vmatpush1.bf16.msra.mxu1 %v1796_v26 }
  0x64   :  { %732 = vmatprep.subr.bf16.mxu1 %v1801_v27 }
  0x67   :  { %733 = vmatpush1.bf16.msra.mxu1 %v1799_v30 }
  0x68   :  { %734 = vmatprep.subr.bf16.mxu1 %v1804_v31 }
  0x69   :  { %12 = vsyncpa [#allocation3], 0  ;;  %v1805_v38 = vld [vmem:[%s2615_s1 + $0x168] ss:$16 sps:$4 sm:$0xff]   ;;  %v1810_v39 = vld [vmem:[%s2615_s1 + $0x18c] ss:$16 sps:$4 sm:$0xff]   ;;  %1221 = vmatpush1.bf16.msra.mxu0 %v1874_v36  ;;  %v132_v19 = vlaneseq }
  0x6a   :  { %v1877_v40 = vld [vmem:[%s2617_s3 + $0xb0] ss:$8 sps:$4 sm:$0xff]   ;;  %1222 = vmatprep.subr.bf16.mxu0 %v1879_v37  ;;  %v1882_v41 = vld [vmem:[%s2617_s3 + $0xc4] ss:$8 sps:$4 sm:$0xff]   ;;  %v1880_v45 = vld [vmem:[%s2617_s3 + $0xc0] ss:$8 sps:$4 sm:$0xff]  }
  0x6b   :  { %735 = vmatpush1.bf16.msra.mxu1 %v1802_v34  ;;  %v1808_v42 = vld [vmem:[%s2615_s1 + $0x188] ss:$16 sps:$4 sm:$0xff]   ;;  %v1813_v44 = vld [vmem:[%s2615_s1 + $0x1ac] ss:$16 sps:$4 sm:$0xff]   ;;  %v1940_v10 = vld [vmem:[%s2619_s5 + $0x40] sm:$0xff]   ;;  %v2456_v22 = vshrl.u32 %v132_v19, 7 }
  0x6c   :  { %736 = vmatprep.subr.bf16.mxu1 %v1807_v35  ;;  %v1885_v46 = vld [vmem:[%s2617_s3 + $0xd4] ss:$8 sps:$4 sm:$0xff]   ;;  %v1811_v47 = vld [vmem:[%s2615_s1 + $0x1a8] ss:$16 sps:$4 sm:$0xff]   ;;  %v1888_v1 = vld [vmem:[%s2617_s3 + $0xe4] ss:$8 sps:$4 sm:$0xff]  }
  0x6d   :  { %1223 = vmatpush1.bf16.msra.mxu0 %v1877_v40  ;;  %v1816_v48 = vld [vmem:[%s2615_s1 + $0x1cc] ss:$16 sps:$4 sm:$0xff]   ;;  %v1883_v49 = vld [vmem:[%s2617_s3 + $0xd0] ss:$8 sps:$4 sm:$0xff]   ;;  %v1886_v4 = vld [vmem:[%s2617_s3 + $0xe0] ss:$8 sps:$4 sm:$0xff]  }
  0x6e   :  { %1224 = vmatprep.subr.bf16.mxu0 %v1882_v41  ;;  %v1814_v50 = vld [vmem:[%s2615_s1 + $0x1c8] ss:$16 sps:$4 sm:$0xff]   ;;  %v1819_v51 = vld [vmem:[%s2615_s1 + $0x1ec] ss:$16 sps:$4 sm:$0xff]   ;;  %v1941_v11 = vld [vmem:[%s2619_s5] sm:$0xff]   ;;  %v134_v25 = vsub.s32 0, %v2456_v22 }
  0x6f   :  { %737 = vmatpush1.bf16.msra.mxu1 %v1805_v38  ;;  %v1817_v52 = vld [vmem:[%s2615_s1 + $0x1e8] ss:$16 sps:$4 sm:$0xff]   ;;  %v1822_v53 = vld [vmem:[%s2615_s1 + $0x20c] ss:$16 sps:$4 sm:$0xff]   ;;  %v1944_v15 = vld [vmem:[%s2619_s5 + $0x50] sm:$0xff]   ;;  %v138_v28 = vsub.s32 1, %v2456_v22 }
  0x70   :  { %738 = vmatprep.subr.bf16.mxu1 %v1810_v39  ;;  %v1820_v54 = vld [vmem:[%s2615_s1 + $0x208] ss:$16 sps:$4 sm:$0xff]   ;;  %v1825_v56 = vld [vmem:[%s2615_s1 + $0x22c] ss:$16 sps:$4 sm:$0xff]   ;;  %v1945_v18 = vld [vmem:[%s2619_s5 + $0x10] sm:$0xff]   ;;  %s1985_s22 = smov [#allocation2]  }
  0x71   :  { %1225 = vmatpush1.bf16.msra.mxu0 %v1880_v45  ;;  %v1823_v57 = vld [vmem:[%s2615_s1 + $0x228] ss:$16 sps:$4 sm:$0xff]   ;;  %v1828_v58 = vld [vmem:[%s2615_s1 + $0x24c] ss:$16 sps:$4 sm:$0xff]   ;;  %v1948_v23 = vld [vmem:[%s2619_s5 + $0x60] sm:$0xff]   ;;  %s1474_s23 = sshll.u32 %s1985_s22, 4  ;;  %s1475_s23 = int_to_ptr.vmem [resolvable:$true] %s1474_s23 }
  0x72   :  { %1226 = vmatprep.subr.bf16.mxu0 %v1885_v46  ;;  %v1826_v59 = vld [vmem:[%s2615_s1 + $0x248] ss:$16 sps:$4 sm:$0xff]   ;;  %v1834_v60 = vld [vmem:[%s2615_s1 + $0x28c] ss:$16 sps:$4 sm:$0xff]   ;;  %v1949_v24 = vld [vmem:[%s2619_s5 + $0x20] sm:$0xff]   ;;  %s1960_s24 = scalar_lea.vmem %s1475_s23, 128  ;;  %p1965_p1 = scmp.lt.s32.totalorder %s1475_s23, %s1475_s23 }
  0x73   :  { %739 = vmatpush1.bf16.msra.mxu1 %v1808_v42  ;;  %v1832_v61 = vld [vmem:[%s2615_s1 + $0x288] ss:$16 sps:$4 sm:$0xff]   ;;  %v1837_v62 = vld [vmem:[%s2615_s1 + $0x2ac] ss:$16 sps:$4 sm:$0xff]   ;;  %v2471_v27 = vld [vmem:[%s2616_s2] sm:$0xf]  ;;  %p1961_p0 = scmp.ne.s32.totalorder %s1475_s23, %s1960_s24  ;;  %p1966_p2 = scmp.lt.s32.totalorder %s1960_s24, %s1960_s24 }
  0x74   :  { %740 = vmatprep.subr.bf16.mxu1 %v1813_v44  ;;  %v1835_v63 = vld [vmem:[%s2615_s1 + $0x2a8] ss:$16 sps:$4 sm:$0xff]   ;;  %v1840_v0 = vld [vmem:[%s2615_s1 + $0x2cc] ss:$16 sps:$4 sm:$0xff]   ;;  %v135_v30 = vrot.slane %v2471_v27, %v134_v25  ;;  %v139_v31 = vrot.slane %v2471_v27, %v138_v28 }
  0x75   :  { %1227 = vmatpush1.bf16.msra.mxu0 %v1883_v49  ;;  %v1838_v3 = vld [vmem:[%s2615_s1 + $0x2c8] ss:$16 sps:$4 sm:$0xff]   ;;  %v1843_v5 = vld [vmem:[%s2615_s1 + $0x2ec] ss:$16 sps:$4 sm:$0xff]   ;;  %p1967_p3 = por %p1966_p2, %p1965_p1 }
  0x76   :  { %1228 = vmatprep.subr.bf16.mxu0 %v1888_v1  ;;  %v1891_v6 = vld [vmem:[%s2617_s3 + $0xf4] ss:$8 sps:$4 sm:$0xff]   ;;  %v1841_v7 = vld [vmem:[%s2615_s1 + $0x2e8] ss:$16 sps:$4 sm:$0xff]   ;;  %v1894_v9 = vld [vmem:[%s2617_s3 + $0x104] ss:$8 sps:$4 sm:$0xff]  }
  0x77   :  { %741 = vmatpush1.bf16.msra.mxu1 %v1811_v47  ;;  %v1889_v8 = vld [vmem:[%s2617_s3 + $0xf0] ss:$8 sps:$4 sm:$0xff]   ;;  %v1942_v12 = vld [vmem:[%s2619_s5 + $0x48] sm:$0xff]   ;;  %v1897_v46 = vld [vmem:[%s2617_s3 + $0x114] ss:$8 sps:$4 sm:$0xff]   ;;  %p1968_p4 = pnand %p1967_p3, %p1961_p0 }
  0x78   :  { %742 = vmatprep.subr.bf16.mxu1 %v1816_v48  ;;  %v1946_v20 = vld [vmem:[%s2619_s5 + $0x58] sm:$0xff]   ;;  %v1950_v26 = vld [vmem:[%s2619_s5 + $0x68] sm:$0xff]  }
  0x79   :  { %1229 = vmatpush1.bf16.msra.mxu0 %v1886_v4  ;;  %v1947_v21 = vld [vmem:[%s2619_s5 + $0x18] sm:$0xff]   ;;  %v1951_v29 = vld [vmem:[%s2619_s5 + $0x28] sm:$0xff]  }
  0x7a   :  { %1230 = vmatprep.subr.bf16.mxu0 %v1891_v6  ;;  %v1892_v45 = vld [vmem:[%s2617_s3 + $0x100] ss:$8 sps:$4 sm:$0xff]   ;;  %v1895_v47 = vld [vmem:[%s2617_s3 + $0x110] ss:$8 sps:$4 sm:$0xff]   ;;  %v1900_v48 = vld [vmem:[%s2617_s3 + $0x124] ss:$8 sps:$4 sm:$0xff]  }
  0x7b   :  { %743 = vmatpush1.bf16.msra.mxu1 %v1814_v50  ;;  %v1898_v49 = vld [vmem:[%s2617_s3 + $0x120] ss:$8 sps:$4 sm:$0xff]   ;;  %v1903_v50 = vld [vmem:[%s2617_s3 + $0x134] ss:$8 sps:$4 sm:$0xff]   ;;  %v1930_v4 = vld [vmem:[%s2617_s3 + $0x1c4] ss:$8 sps:$4 sm:$0xff]  }
  0x7c   :  { %744 = vmatprep.subr.bf16.mxu1 %v1819_v51  ;;  %v1901_v51 = vld [vmem:[%s2617_s3 + $0x130] ss:$8 sps:$4 sm:$0xff]   ;;  %v1927_v1 = vld [vmem:[%s2617_s3 + $0x1b4] ss:$8 sps:$4 sm:$0xff]  }
  0x7d   :  { %1231 = vmatpush1.bf16.msra.mxu0 %v1889_v8  ;;  %v1933_v6 = vld [vmem:[%s2617_s3 + $0x1d4] ss:$8 sps:$4 sm:$0xff]   ;;  %v1936_v8 = vld [vmem:[%s2617_s3 + $0x1e4] ss:$8 sps:$4 sm:$0xff]  }
  0x7e   :  { %1241 = vmatprep.subr.bf16.mxu0 %v1894_v9  ;;  %v1934_v9 = vld [vmem:[%s2617_s3 + $0x1e0] ss:$8 sps:$4 sm:$0xff]  }
  0x7f   :  { %745 = vmatpush1.bf16.msra.mxu1 %v1817_v52  ;;  %v1906_v52 = vld [vmem:[%s2617_s3 + $0x144] ss:$8 sps:$4 sm:$0xff]  }
  0x80   :  { %755 = vmatprep.subr.bf16.mxu1 %v1822_v53  ;;  %v1904_v53 = vld [vmem:[%s2617_s3 + $0x140] ss:$8 sps:$4 sm:$0xff]  }
  0x82   :  { %747 = vmatmul.mubr.bf16.vlgmr.msra.gmra.mrb[4].mxu1 %v2186_v55  ;;  %v1831_v55 = vld [vmem:[%s2615_s1 + $0x26c] ss:$16 sps:$4 sm:$0xff]  }
  0x83   :  { %756 = vmatpush1.bf16.msra.mxu1 %v1820_v54  ;;  %787 = vmatprep.mubr.bf16.mxu1 %v1984_v2  ;;  %v1829_v2 = vld [vmem:[%s2615_s1 + $0x268] ss:$16 sps:$4 sm:$0xff]   ;;  %v1909_v54 = vld [vmem:[%s2617_s3 + $0x154] ss:$8 sps:$4 sm:$0xff]  }
  0x84   :  { %757 = vmatprep.subr.bf16.mxu1 %v1825_v56  ;;  %v1907_v56 = vld [vmem:[%s2617_s3 + $0x150] ss:$8 sps:$4 sm:$0xff]  }
  0x87   :  { %758 = vmatpush1.bf16.msra.mxu1 %v1823_v57  ;;  %v1912_v57 = vld [vmem:[%s2617_s3 + $0x164] ss:$8 sps:$4 sm:$0xff]  }
  0x88   :  { %759 = vmatprep.subr.bf16.mxu1 %v1828_v58  ;;  %v1910_v58 = vld [vmem:[%s2617_s3 + $0x160] ss:$8 sps:$4 sm:$0xff]  }
  0x8b   :  { %760 = vmatpush1.bf16.msra.mxu1 %v1826_v59  ;;  %v1915_v59 = vld [vmem:[%s2617_s3 + $0x174] ss:$8 sps:$4 sm:$0xff]  }
  0x8c   :  { %761 = vmatprep.subr.bf16.mxu1 %v1831_v55  ;;  %v1913_v55 = vld [vmem:[%s2617_s3 + $0x170] ss:$8 sps:$4 sm:$0xff]  }
  0x8f   :  { %762 = vmatpush1.bf16.msra.mxu1 %v1829_v2  ;;  %v1918_v2 = vld [vmem:[%s2617_s3 + $0x184] ss:$8 sps:$4 sm:$0xff]  }
  0x90   :  { %763 = vmatprep.subr.bf16.mxu1 %v1834_v60  ;;  %v1916_v60 = vld [vmem:[%s2617_s3 + $0x180] ss:$8 sps:$4 sm:$0xff]  }
  0x93   :  { %764 = vmatpush1.bf16.msra.mxu1 %v1832_v61  ;;  %v1921_v61 = vld [vmem:[%s2617_s3 + $0x194] ss:$8 sps:$4 sm:$0xff]  }
  0x94   :  { %765 = vmatprep.subr.bf16.mxu1 %v1837_v62  ;;  %v1919_v62 = vld [vmem:[%s2617_s3 + $0x190] ss:$8 sps:$4 sm:$0xff]  }
  0x97   :  { %766 = vmatpush1.bf16.msra.mxu1 %v1835_v63  ;;  %v1924_v63 = vld [vmem:[%s2617_s3 + $0x1a4] ss:$8 sps:$4 sm:$0xff]  }
  0x98   :  { %767 = vmatprep.subr.bf16.mxu1 %v1840_v0  ;;  %v1922_v0 = vld [vmem:[%s2617_s3 + $0x1a0] ss:$8 sps:$4 sm:$0xff]  }
  0x9b   :  { %768 = vmatpush1.bf16.msra.mxu1 %v1838_v3  ;;  %v1925_v3 = vld [vmem:[%s2617_s3 + $0x1b0] ss:$8 sps:$4 sm:$0xff]  }
  0x9c   :  { %769 = vmatprep.subr.bf16.mxu1 %v1843_v5  ;;  %v1928_v5 = vld [vmem:[%s2617_s3 + $0x1c0] ss:$8 sps:$4 sm:$0xff]  }
  0x9f   :  { %770 = vmatpush1.bf16.msra.mxu1 %v1841_v7  ;;  %v1931_v7 = vld [vmem:[%s2617_s3 + $0x1d0] ss:$8 sps:$4 sm:$0xff]  }
  0xa0   :  { %1660 = vmatprep.subr.bf16.mxu1 %v1940_v10  ;;  %v1939_v10 = vld [vmem:[%s2617_s3 + $0x1f4] ss:$8 sps:$4 sm:$0xff]  }
  0xa2   :  { %788 = vmatmul.mubr.bf16.vlgmr.msra.gmra.mrb[4].mxu1 %v2150_v43  ;;  %v1943_v43 = vld [vmem:[%s2619_s5 + $0x8] sm:$0xff]  }
  0xa3   :  { %1661 = vmatpush3.bf16.msra.mxu1 %v1941_v11  ;;  %v1937_v11 = vld [vmem:[%s2617_s3 + $0x1f0] ss:$8 sps:$4 sm:$0xff]  }
  0xa4   :  { %1662 = vmatprep.subr.bf16.mxu1 %v1942_v12  ;;  %v142_v12 = vsub.s32 2, %v2456_v22 }
  0xa7   :  { %1663 = vmatpush3.bf16.msra.mxu1 %v1943_v43  ;;  %v143_v43 = vrot.slane %v2471_v27, %v142_v12 }
  0xa8   :  { %1664 = vmatprep.subr.bf16.mxu1 %v1944_v15 }
  0xab   :  { %1665 = vmatpush3.bf16.msra.mxu1 %v1945_v18 }
  0xac   :  { %1666 = vmatprep.subr.bf16.mxu1 %v1946_v20 }
  0xaf   :  { %1667 = vmatpush3.bf16.msra.mxu1 %v1947_v21 }
  0xb0   :  { %1668 = vmatprep.subr.bf16.mxu1 %v1948_v23 }
  0xb3   :  { %1669 = vmatpush3.bf16.msra.mxu1 %v1949_v24 }
  0xb4   :  { %1670 = vmatprep.subr.bf16.mxu1 %v1950_v26 }
  0xb7   :  { %1671 = vmatpush3.bf16.msra.mxu1 %v1951_v29  ;;  %v1952_v29 = vld [vmem:[%s2619_s5 + $0x70] sm:$0xff]  }
  0xb8   :  { %1672 = vmatprep.subr.bf16.mxu1 %v1952_v29 }
  0xfa   :  { %v707_v13 = vpop.f32.mrb[0].mxu0 }
  0xfb   :  { %v709_v14 = vpop.f32.mrb[1].mxu0 }
  0xfc   :  { %v711_v16 = vpop.f32.mrb[2].mxu0 }
  0xfd   :  { %v712_v17 = vpop.f32.mrb[3].mxu0 }
 0x115   :  { %v666_v32 = vpop.f32.mrb[0].mxu1 }
 0x116   :  { %v667_v33 = vadd.f32 %v666_v32, %v135_v30  ;;  %v668_v34 = vpop.f32.mrb[1].mxu1  ;;  %v1954_v30 = vld [vmem:[%s2619_s5 + $0x78] sm:$0xff]   ;;  %v868_v32 = vld [vmem:[%s2618_s4] sm:$0x3] }
 0x117   :  { %v669_v35 = vadd.f32 %v668_v34, %v139_v31  ;;  %v670_v36 = vpop.f32.mrb[2].mxu1  ;;  %v1955_v31 = vld [vmem:[%s2619_s5 + $0x38] sm:$0xff]   ;;  %v877_v34 = vrot.slane %v868_v32, %v138_v28 }
 0x118   :  { %v708_v37 = vadd.f32 %v707_v13, %v667_v33  ;;  %v671_v38 = vpop.f32.mrb[3].mxu1  ;;  %v146_v13 = vsub.s32 3, %v2456_v22  ;;  %v873_v33 = vrot.slane %v868_v32, %v134_v25  ;;  %v1642_v25 = vld [vmem:[%s2620_s6] ss:$0 sm:$0xff] }
 0x119   :  { %v710_v39 = vadd.f32 %v709_v14, %v669_v35 }
 0x11a   :  { %v796_v40 = vmax.f32 %v708_v37, 0.0  ;;  %v147_v14 = vrot.slane %v2471_v27, %v146_v13  ;;  %v1953_v27 = vld [vmem:[%s2619_s5 + $0x30] sm:$0xff]  }
 0x11b   :  { %v797_v41 = vmax.f32 %v710_v39, 0.0  ;;  %1673 = vmatpush3.bf16.msra.mxu1 %v1953_v27 }
 0x11c   :  { %v800_v42 = vpack.c.bf16 %v796_v40, %v796_v40  ;;  %1674 = vmatprep.subr.bf16.mxu1 %v1954_v30 }
 0x11d   :  { %v801_v44 = vpack.c.bf16 %v797_v41, %v797_v41 }
 0x11f   :  { %1232 = vmatprep.mubr.bf16.mxu0 %v801_v44  ;;  %1675 = vmatpush3.bf16.msra.mxu1 %v1955_v31 }
 0x120   :  { %1233 = vmatmul.mubr.bf16.vlgmr.msra.gmra.mrb[4].mxu0 %v800_v42 }
 0x121   :  { %1242 = vmatpush1.bf16.msra.mxu0 %v1892_v45 }
 0x122   :  { %1243 = vmatprep.subr.bf16.mxu0 %v1897_v46 }
 0x125   :  { %1244 = vmatpush1.bf16.msra.mxu0 %v1895_v47 }
 0x126   :  { %1245 = vmatprep.subr.bf16.mxu0 %v1900_v48 }
 0x129   :  { %1246 = vmatpush1.bf16.msra.mxu0 %v1898_v49 }
 0x12a   :  { %1247 = vmatprep.subr.bf16.mxu0 %v1903_v50 }
 0x12d   :  { %1248 = vmatpush1.bf16.msra.mxu0 %v1901_v51 }
 0x12e   :  { %1249 = vmatprep.subr.bf16.mxu0 %v1906_v52 }
 0x131   :  { %1250 = vmatpush1.bf16.msra.mxu0 %v1904_v53 }
 0x132   :  { %1251 = vmatprep.subr.bf16.mxu0 %v1909_v54 }
 0x135   :  { %1252 = vmatpush1.bf16.msra.mxu0 %v1907_v56 }
 0x136   :  { %1253 = vmatprep.subr.bf16.mxu0 %v1912_v57 }
 0x139   :  { %1254 = vmatpush1.bf16.msra.mxu0 %v1910_v58 }
 0x13a   :  { %1255 = vmatprep.subr.bf16.mxu0 %v1915_v59 }
 0x13d   :  { %1256 = vmatpush1.bf16.msra.mxu0 %v1913_v55 }
 0x13e   :  { %1257 = vmatprep.subr.bf16.mxu0 %v1918_v2 }
 0x141   :  { %1258 = vmatpush1.bf16.msra.mxu0 %v1916_v60 }
 0x142   :  { %1259 = vmatprep.subr.bf16.mxu0 %v1921_v61 }
 0x145   :  { %1260 = vmatpush1.bf16.msra.mxu0 %v1919_v62 }
 0x146   :  { %1261 = vmatprep.subr.bf16.mxu0 %v1924_v63 }
 0x149   :  { %1262 = vmatpush1.bf16.msra.mxu0 %v1922_v0 }
 0x14a   :  { %1263 = vmatprep.subr.bf16.mxu0 %v1927_v1 }
 0x14d   :  { %1264 = vmatpush1.bf16.msra.mxu0 %v1925_v3 }
 0x14e   :  { %1265 = vmatprep.subr.bf16.mxu0 %v1930_v4 }
 0x151   :  { %1266 = vmatpush1.bf16.msra.mxu0 %v1928_v5 }
 0x152   :  { %1267 = vmatprep.subr.bf16.mxu0 %v1933_v6 }
 0x155   :  { %1268 = vmatpush1.bf16.msra.mxu0 %v1931_v7 }
 0x156   :  { %1269 = vmatprep.subr.bf16.mxu0 %v1936_v8 }
 0x159   :  { %1270 = vmatpush1.bf16.msra.mxu0 %v1934_v9 }
 0x15a   :  { %1271 = vmatprep.subr.bf16.mxu0 %v1939_v10 }
 0x15d   :  { %1272 = vmatpush1.bf16.msra.mxu0 %v1937_v11 }
 0x175   :  { %v789_v15 = vpop.f32.mrb[4].mxu1 }
 0x176   :  { %v1686_v16 = vadd.f32 %v789_v15, %v143_v43  ;;  %v791_v17 = vpop.f32.mrb[5].mxu1 }
 0x177   :  { %v1687_v18 = vadd.f32 %v791_v17, %v147_v14  ;;  %v793_v19 = vpop.f32.mrb[6].mxu1 }
 0x178   :  { %v798_v20 = vmax.f32 %v1686_v16, 0.0  ;;  %v794_v21 = vpop.f32.mrb[7].mxu1 }
 0x179   :  { %v799_v23 = vmax.f32 %v1687_v18, 0.0 }
 0x17a   :  { %v802_v26 = vpack.c.bf16 %v798_v20, %v798_v20 }
 0x17b   :  { %v803_v24 = vpack.c.bf16 %v799_v23, %v799_v23 }
 0x17d   :  { %1273 = vmatprep.mubr.bf16.mxu0 %v803_v24 }
 0x17e   :  { %1274 = vmatmul.mubr.bf16.vlgmr.msra.gmra.mrb[4].mxu0 %v802_v26 }
 0x251   :  { %v1275_v35 = vpop.f32.mrb[4].mxu0 }
 0x252   :  { %v1688_v36 = vadd.f32 %v1275_v35, %v873_v33  ;;  %v1277_v37 = vpop.f32.mrb[5].mxu0 }
 0x253   :  { %v1689_v38 = vadd.f32 %v1277_v37, %v877_v34  ;;  %v1279_v39 = vpop.f32.mrb[6].mxu0 }
 0x254   :  { %v1282_v40 = vmax.f32 %v1688_v36, 0.0  ;;  %v1280_v41 = vpop.f32.mrb[7].mxu0 }
 0x255   :  { %v1283_v42 = vmax.f32 %v1689_v38, 0.0 }
 0x256   :  { %v1284_v45 = vpack.c.bf16 %v1282_v40, %v1282_v40 }
 0x257   :  { %v1285_v44 = vpack.c.bf16 %v1283_v42, %v1283_v42 }
 0x259   :  { %1453 = vmatprep.mubr.bf16.mxu1 %v1285_v44 }
 0x25a   :  { %1454 = vmatmul.mubr.bf16.vlgmr.msra.gmra.mrb[8].mxu1 %v1284_v45 }
 0x32d   :  { %v1676_v46 = vpop.f32.mrb[8].mxu1 }
 0x32e   :  { %v1677_v47 = vpop.f32.mrb[9].mxu1 }
 0x32f   :  { %v1678_v22 = vadd.f32 %v1677_v47, %v1676_v46  ;;  %v1679_v28 = vpop.f32.mrb[10].mxu1 }
 0x330   :  { %v1680_v48 = vpop.f32.mrb[11].mxu1 }
 0x331   :  { %v1456_v49 = vadd.f32 %v1678_v22, %v1642_v25 }
 0x333   :  { %v1659_v50 = vmul.f32 -1.442695, %v1456_v49 }
 0x335   :  { %1956 = vpow2.f32 %v1659_v50 }
 0x33f   :  { %v1957_v51 = vpop.eup %1956 }
 0x340   :  { %v1464_v52 = vadd.f32 1.0, %v1957_v51 }
 0x342   :  { %1958 = vrcp.f32 %v1464_v52 }
 0x34c   :  { %v1959_v53 = vpop.eup %1958 }
 0x34d   :  { %1467 = vst [vmem:[#allocation2] sm:$0xff] %v1959_v53 }
 0x34e   :  { %1971 = shalt.err (!%p1968_p4)
}
 0x34f   :  { %s1972_s26 = scalar_lea.hbm %s2621_s7, 128 }
 0x350   :  { %p1973_p5 = scmp.ne.s32.totalorder %s2621_s7, %s1972_s26  ;;  %p1976_p6 = scmp.lt.u32.totalorder %s1972_s26, %s2621_s7 }
 0x352   :  { %p1978_p7 = pnand %p1976_p6, %p1973_p5 }
 0x354   :  { %1981 = shalt.err (!%p1978_p7)
}
 0x355   :  { %1477 = dma.vmem_to_hbm [thread:$0]  %s1475_s23, 128, %s2621_s7, [#allocation3]  }
 0x356   :  { %1982 = dma.done.wait [#allocation3], 128  }
 0x357   :  { %1983 = vsyncadd [#allocation3], 4294967168 }
 0x358   :  { %1481 = vsyncpa [#allocation3], 1 }

</bundles_post_ra>
